<compile_context>
chip_gen: v7x
topology: tpu7x:2x2x1
jax: 0.10.0
libtpu: 0.0.40
codegen_flags: <defaults>
</compile_context>

<pallas_src>
import functools

import jax
import jax.numpy as jnp
from jax.experimental import pallas as pl
from jax.experimental.pallas import tpu as pltpu


# ----------------------------------------------------------------------------
# Row-tiled dense layer: y = x @ W + b
# ----------------------------------------------------------------------------
def _linear_kernel(x_ref, w_ref, b_ref, o_ref):
    o_ref[...] = (jnp.dot(x_ref[...], w_ref[...], preferred_element_type=jnp.float32)
                  + b_ref[...])


def linear(x, w, b, *, max_tile_m=256):
    M, K = x.shape
    N = w.shape[1]
    tm = M if M <= max_tile_m else max_tile_m          # max_tile_m is a multiple of 8
    return pl.pallas_call(
        _linear_kernel,
        out_shape=jax.ShapeDtypeStruct((M, N), jnp.float32),
        grid=(pl.cdiv(M, tm),),
        in_specs=[pl.BlockSpec((tm, K), lambda i: (i, 0)),
                  pl.BlockSpec((K, N), lambda i: (0, 0)),
                  pl.BlockSpec((1, N), lambda i: (0, 0))],
        out_specs=pl.BlockSpec((tm, N), lambda i: (i, 0)),
        compiler_params=pltpu.CompilerParams(dimension_semantics=("parallel",)),
    )(x, w, b.reshape(1, N))


# ----------------------------------------------------------------------------
# Output projection + LogSoftmax(dim=-1), fused, row-tiled.
# ----------------------------------------------------------------------------
def _proj_logsoftmax_kernel(x_ref, w_ref, b_ref, o_ref):
    logits = (jnp.dot(x_ref[...], w_ref[...], preferred_element_type=jnp.float32)
              + b_ref[...])
    m = jnp.max(logits, axis=-1, keepdims=True)
    shifted = logits - m
    lse = jnp.log(jnp.sum(jnp.exp(shifted), axis=-1, keepdims=True))
    o_ref[...] = shifted - lse


def proj_logsoftmax(x, w, b, *, max_tile_m=256):
    M, K = x.shape
    N = w.shape[1]
    tm = M if M <= max_tile_m else max_tile_m
    return pl.pallas_call(
        _proj_logsoftmax_kernel,
        out_shape=jax.ShapeDtypeStruct((M, N), jnp.float32),
        grid=(pl.cdiv(M, tm),),
        in_specs=[pl.BlockSpec((tm, K), lambda i: (i, 0)),
                  pl.BlockSpec((K, N), lambda i: (0, 0)),
                  pl.BlockSpec((1, N), lambda i: (0, 0))],
        out_specs=pl.BlockSpec((tm, N), lambda i: (i, 0)),
        compiler_params=pltpu.CompilerParams(dimension_semantics=("parallel",)),
    )(x, w, b.reshape(1, N))


# ----------------------------------------------------------------------------
# Fused VAE head: [mean|logv] = h @ W_ml + b_ml ; z = eps*exp(0.5*logv)+mean ;
#                 h_dec0 = z @ W_l2h + b_l2h        (single pallas_call)
# ----------------------------------------------------------------------------
def _vae_head_kernel(h_ref, eps_ref, wml_ref, bml_ref, wl2h_ref, bl2h_ref,
                     mean_ref, logv_ref, hdec_ref):
    ml = (jnp.dot(h_ref[...], wml_ref[...], preferred_element_type=jnp.float32)
          + bml_ref[...])
    L = mean_ref.shape[1]
    mean = ml[:, :L]
    logv = ml[:, L:2 * L]
    std = jnp.exp(0.5 * logv)
    z = eps_ref[...] * std + mean
    hdec_ref[...] = (jnp.dot(z, wl2h_ref[...], preferred_element_type=jnp.float32)
                     + bl2h_ref[...])
    mean_ref[...] = mean
    logv_ref[...] = logv


def vae_head(h_last, eps, w_mean, b_mean, w_logv, b_logv, w_l2h, b_l2h):
    B, H = h_last.shape
    L = w_mean.shape[1]
    w_ml = jnp.concatenate([w_mean, w_logv], axis=1)                 # (H, 2L)
    b_ml = jnp.concatenate([b_mean, b_logv], axis=0).reshape(1, 2 * L)
    return pl.pallas_call(
        _vae_head_kernel,
        out_shape=(jax.ShapeDtypeStruct((B, L), jnp.float32),
                   jax.ShapeDtypeStruct((B, L), jnp.float32),
                   jax.ShapeDtypeStruct((B, H), jnp.float32)),
        grid=(1,),
        in_specs=[pl.BlockSpec((B, H), lambda i: (0, 0)),
                  pl.BlockSpec((B, L), lambda i: (0, 0)),
                  pl.BlockSpec((H, 2 * L), lambda i: (0, 0)),
                  pl.BlockSpec((1, 2 * L), lambda i: (0, 0)),
                  pl.BlockSpec((L, H), lambda i: (0, 0)),
                  pl.BlockSpec((1, H), lambda i: (0, 0))],
        out_specs=[pl.BlockSpec((B, L), lambda i: (0, 0)),
                   pl.BlockSpec((B, L), lambda i: (0, 0)),
                   pl.BlockSpec((B, H), lambda i: (0, 0))],
    )(h_last, eps, w_ml, b_ml, w_l2h, b_l2h.reshape(1, H))


# ----------------------------------------------------------------------------
# GRU recurrence kernel (input projection already hoisted out).
# Grid iterates over time CHUNKS; hidden state is carried in a VMEM scratch.
# ----------------------------------------------------------------------------
def _gru_scan_kernel(gi_ref, mask_ref, h0_ref, whh_ref, bhn_ref,
                     outs_ref, hlast_ref, h_scr):
    c = pl.program_id(0)

    @pl.when(c == 0)
    def _():
        h_scr[...] = h0_ref[...]

    H = h0_ref.shape[1]
    tc = gi_ref.shape[1]
    whh = whh_ref[...]                    # (H, 3H), resident across the chunk
    bhn = bhn_ref[...]                    # (1, H)   n-gate hidden bias

    h = h_scr[...]                        # (B, H)
    for tl in range(tc):                  # statically unrolled time chunk
        gi = gi_ref[:, tl, :]             # (B, 3H) precomputed x@W_ih + folded biases
        m = mask_ref[:, tl, :]            # (B, 1)  1.0 while t < length
        gh = jnp.dot(h, whh, preferred_element_type=jnp.float32)   # (B, 3H)
        # PyTorch GRU gate ordering: [r, z, n]; b_ih and b_hh[r,z] folded into gi.
        r = jax.nn.sigmoid(gi[:, 0 * H:1 * H] + gh[:, 0 * H:1 * H])
        zg = jax.nn.sigmoid(gi[:, 1 * H:2 * H] + gh[:, 1 * H:2 * H])
        n = jnp.tanh(gi[:, 2 * H:3 * H] + r * (gh[:, 2 * H:3 * H] + bhn))
        h_new = (1.0 - zg) * n + zg * h
        outs_ref[:, tl, :] = m * h_new    # pad_packed -> zeros at padded steps
        h = h + m * (h_new - h)           # freeze finished sequences (packed semantics)

    h_scr[...] = h

    @pl.when(c == pl.num_programs(0) - 1)
    def _():
        hlast_ref[...] = h                # write final hidden only once


def _pick_time_chunk(S, max_chunk=128):
    if S <= max_chunk:
        return S
    for tc in range(max_chunk, 7, -8):
        if S % tc == 0:
            return tc
    return S


def gru_layer(x_bse, mask_bs1, h0, wih, whh, bih, bhh):
    """x_bse: (B, S, E_in) f32; mask_bs1: (B, S, 1) f32; h0: (B, H) f32."""
    B, S, E = x_bse.shape
    H = h0.shape[1]

    # Hoisted input projection over ALL timesteps as one matmul; fold b_ih and
    # the r/z portion of b_hh into its bias (the n-gate hidden bias must stay
    # inside r * (.) and is passed to the kernel separately).
    b_fold = bih + jnp.concatenate([bhh[:2 * H], jnp.zeros((H,), bhh.dtype)], axis=0)
    gi = linear(x_bse.reshape(B * S, E), wih, b_fold).reshape(B, S, 3 * H)
    bhn = bhh[2 * H:].reshape(1, H)

    tc = _pick_time_chunk(S)
    grid_spec = pltpu.PrefetchScalarGridSpec(
        num_scalar_prefetch=0,
        grid=(pl.cdiv(S, tc),),
        in_specs=[
            pl.BlockSpec((B, tc, 3 * H), lambda c: (0, c, 0)),   # gi chunk
            pl.BlockSpec((B, tc, 1), lambda c: (0, c, 0)),       # mask chunk
            pl.BlockSpec((B, H), lambda c: (0, 0)),              # h0
            pl.BlockSpec((H, 3 * H), lambda c: (0, 0)),          # W_hh
            pl.BlockSpec((1, H), lambda c: (0, 0)),              # b_hh[n]
        ],
        out_specs=[
            pl.BlockSpec((B, tc, H), lambda c: (0, c, 0)),       # per-step hidden
            pl.BlockSpec((B, H), lambda c: (0, 0)),              # final hidden
        ],
        scratch_shapes=[pltpu.VMEM((B, H), jnp.float32)],
    )
    outs, h_last = pl.pallas_call(
        _gru_scan_kernel,
        out_shape=(jax.ShapeDtypeStruct((B, S, H), jnp.float32),
                   jax.ShapeDtypeStruct((B, H), jnp.float32)),
        grid_spec=grid_spec,
        compiler_params=pltpu.CompilerParams(dimension_semantics=("arbitrary",)),
    )(gi, mask_bs1, h0, whh, bhn)
    return outs, h_last


# ----------------------------------------------------------------------------
# Parameter init (deterministic, synthetic)
# ----------------------------------------------------------------------------
def init_params(key, vocab_size, embed_size, hidden_dim, num_layers, latent_dim):
    ks = iter(jax.random.split(key, 64))
    u = lambda k, shape, s: jax.random.uniform(k, shape, jnp.float32, -s, s)
    H = hidden_dim

    def gru_params(in_dim):
        s = 1.0 / jnp.sqrt(H)
        return (u(next(ks), (in_dim, 3 * H), s),   # W_ih (transposed vs. PyTorch)
                u(next(ks), (H, 3 * H), s),        # W_hh (transposed)
                u(next(ks), (3 * H,), s),          # b_ih
                u(next(ks), (3 * H,), s))          # b_hh

    params = {
        "embedding": jax.random.normal(next(ks), (vocab_size, embed_size), jnp.float32),
        "enc": [gru_params(embed_size if l == 0 else H) for l in range(num_layers)],
        "dec": [gru_params(embed_size if l == 0 else H) for l in range(num_layers)],
        "w_mean": u(next(ks), (H, latent_dim), 1.0 / jnp.sqrt(H)),
        "b_mean": u(next(ks), (latent_dim,), 1.0 / jnp.sqrt(H)),
        "w_logv": u(next(ks), (H, latent_dim), 1.0 / jnp.sqrt(H)),
        "b_logv": u(next(ks), (latent_dim,), 1.0 / jnp.sqrt(H)),
        "w_l2h": u(next(ks), (latent_dim, H), 1.0 / jnp.sqrt(latent_dim)),
        "b_l2h": u(next(ks), (H,), 1.0 / jnp.sqrt(latent_dim)),
        "w_out": u(next(ks), (H, vocab_size), 1.0 / jnp.sqrt(H)),
        "b_out": u(next(ks), (vocab_size,), 1.0 / jnp.sqrt(H)),
    }
    return params


# ----------------------------------------------------------------------------
# Forward pass (mirrors TextVAE.forward with cell='gru')
# ----------------------------------------------------------------------------
def textvae_forward(params, x_tokens, lengths, z_key,
                    hidden_dim, num_layers, latent_dim, vocab_size):
    B, S = x_tokens.shape
    H = hidden_dim

    # PyTorch sorts by length for pack_padded_sequence; the mask-based GRU is
    # order-independent so the sort + unsort cancels out and is dropped.

    x_emb = jnp.take(params["embedding"], x_tokens, axis=0).astype(jnp.float32)  # (B,S,E)

    t_idx = jnp.arange(S, dtype=jnp.int32)[None, :]
    mask = (t_idx < lengths[:, None].astype(jnp.int32)).astype(jnp.float32)[..., None]  # (B,S,1)

    # ---- encoder GRU stack ----
    inp = x_emb
    h_last = jnp.zeros((B, H), jnp.float32)
    for l in range(num_layers):
        wih, whh, bih, bhh = params["enc"][l]
        h0 = jnp.zeros((B, H), jnp.float32)
        inp, h_last = gru_layer(inp, mask, h0, wih, whh, bih, bhh)
    # h_last == h_n[-1] of the packed encoder

    eps = jax.random.normal(z_key, (B, latent_dim), jnp.float32)   # torch.randn analogue
    mean, logv, h_dec0 = vae_head(h_last, eps,
                                  params["w_mean"], params["b_mean"],
                                  params["w_logv"], params["b_logv"],
                                  params["w_l2h"], params["b_l2h"])

    # ---- decoder GRU stack ----
    inp = x_emb
    for l in range(num_layers):
        wih, whh, bih, bhh = params["dec"][l]
        h0 = h_dec0 if l == 0 else jnp.zeros((B, H), jnp.float32)
        inp, _ = gru_layer(inp, mask, h0, wih, whh, bih, bhh)

    flat = inp.reshape(B * S, H)                                   # already batch-major
    log_prob = proj_logsoftmax(flat, params["w_out"], params["b_out"])
    log_prob = log_prob.reshape(B, S, vocab_size)
    return log_prob, mean, logv


# ----------------------------------------------------------------------------
if __name__ == "__main__":
    VOCAB, EMBED, HIDDEN, LAYERS, LATENT = 32, 16, 32, 2, 8
    B, S = 4, 8

    root = jax.random.PRNGKey(0)
    k_param, k_tok, k_z = jax.random.split(root, 3)

    params = init_params(k_param, VOCAB, EMBED, HIDDEN, LAYERS, LATENT)
    x = jax.random.randint(k_tok, (B, S), 0, VOCAB, dtype=jnp.int32)
    lengths = jnp.array([8, 5, 8, 3], dtype=jnp.int32)

    fwd = functools.partial(textvae_forward,
                            hidden_dim=HIDDEN, num_layers=LAYERS,
                            latent_dim=LATENT, vocab_size=VOCAB)
    log_prob, mean, logv = fwd(params, x, lengths, k_z)
    jax.block_until_ready((log_prob, mean, logv))

    assert log_prob.shape == (B, S, VOCAB)
    assert mean.shape == (B, LATENT) and logv.shape == (B, LATENT)
    # valid rows must be proper log-probabilities (sum(exp) == 1)
    assert bool(jnp.allclose(jnp.sum(jnp.exp(log_prob[0, 0])), 1.0, atol=1e-4))
    print("KERNEL_OK")
</pallas_src>

<mosaic_0001>
module attributes {stable_mosaic.version = 11 : i64} {
  func.func @_linear_kernel(%arg0: i32, %arg1: memref<32x16xf32, #tpu.memory_space<vmem>>, %arg2: memref<16x96xf32, #tpu.memory_space<vmem>>, %arg3: memref<1x96xf32, #tpu.memory_space<vmem>>, %arg4: memref<32x96xf32, #tpu.memory_space<vmem>>) attributes {dimension_semantics = [#tpu.dimension_semantics<parallel>], iteration_bounds = array<i64: 1>, scalar_prefetch = 0 : i64, scratch_operands = 0 : i64, tpu.core_type = #tpu.core_type<tc>, window_params = [{transform_indices = @transform_0, window_bounds = array<i64: 32, 16>}, {pipeline_mode = #tpu.pipeline_mode<synchronous>, transform_indices = @transform_1, window_bounds = array<i64: 16, 96>}, {pipeline_mode = #tpu.pipeline_mode<synchronous>, transform_indices = @transform_2, window_bounds = array<i64: 1, 96>}, {transform_indices = @transform_3, window_bounds = array<i64: 32, 96>}]} {
    %c0 = arith.constant 0 : index
    %c0_0 = arith.constant 0 : index
    %0 = vector.load %arg1[%c0, %c0_0] : memref<32x16xf32, #tpu.memory_space<vmem>>, vector<32x16xf32>
    %c0_1 = arith.constant 0 : index
    %c0_2 = arith.constant 0 : index
    %1 = vector.load %arg2[%c0_1, %c0_2] : memref<16x96xf32, #tpu.memory_space<vmem>>, vector<16x96xf32>
    %cst = arith.constant dense<0.000000e+00> : vector<32x96xf32>
    %2 = tpu.matmul %0, %1, %cst {dimension_numbers = #tpu.dot_dimension_numbers<[1], [0], [0], [1], [0, 0, 1, 1], [], []>} : vector<32x16xf32>, vector<16x96xf32>, vector<32x96xf32> -> vector<32x96xf32>
    %c0_3 = arith.constant 0 : index
    %c0_4 = arith.constant 0 : index
    %3 = vector.load %arg3[%c0_3, %c0_4] : memref<1x96xf32, #tpu.memory_space<vmem>>, vector<1x96xf32>
    %4 = vector.broadcast %3 : vector<1x96xf32> to vector<32x96xf32>
    %5 = arith.addf %2, %4 : vector<32x96xf32>
    %c0_5 = arith.constant 0 : index
    %c0_6 = arith.constant 0 : index
    %6 = vector.load %arg4[%c0_5, %c0_6] : memref<32x96xf32, #tpu.memory_space<vmem>>, vector<32x96xf32>
    tpu.vector_store %arg4[%c0_5, %c0_6], %5 {strides = array<i32>} : memref<32x96xf32, #tpu.memory_space<vmem>>, vector<32x96xf32>,
    return
  }
  func.func @transform_0(%arg0: i32) -> (i32, i32) {
    %c0_i32 = arith.constant 0 : i32
    %c0_i32_0 = arith.constant 0 : i32
    return %arg0, %c0_i32 : i32, i32
  }
  func.func @transform_1(%arg0: i32) -> (i32, i32) {
    %c0_i32 = arith.constant 0 : i32
    %c0_i32_0 = arith.constant 0 : i32
    %c0_i32_1 = arith.constant 0 : i32
    return %c0_i32, %c0_i32_0 : i32, i32
  }
  func.func @transform_2(%arg0: i32) -> (i32, i32) {
    %c0_i32 = arith.constant 0 : i32
    %c0_i32_0 = arith.constant 0 : i32
    %c0_i32_1 = arith.constant 0 : i32
    return %c0_i32, %c0_i32_0 : i32, i32
  }
  func.func @transform_3(%arg0: i32) -> (i32, i32) {
    %c0_i32 = arith.constant 0 : i32
    %c0_i32_0 = arith.constant 0 : i32
    return %arg0, %c0_i32 : i32, i32
  }
}

</mosaic_0001>

<bundles_post_ra>
// kernel: tpu_custom_call.1
= control target key start
LH: loop header
LB: loop body
LE: loop exit
PB: predicated region body
PF: predicated region fallthrough
CT: control target
= control target key end

     0   :  { %vm28_vm0 = vcmask 130048   ;;  %s257_s0 = inlined_call_operand.vmem [shape: f32[32,16], index: 0, kind: input, shape index: {}]   ;;  %s258_s1 = inlined_call_operand.vmem [shape: f32[16,96], index: 1, kind: input, shape index: {}]   ;;  %s259_s2 = inlined_call_operand.vmem [shape: f32[1,96], index: 2, kind: input, shape index: {}]   ;;  %s260_s3 = inlined_call_operand.hbm [shape: f32[32,96], index: 3, kind: output, shape index: {}]  }
   0x1   :  { %v19_v0 = vld [vmem:[%s258_s1] sm:$0xff]  ;;  %v20_v1 = vld [vmem:[%s258_s1 + $0x8] sm:$0xff]  ;;  %v17_v4 = vld [vmem:[%s257_s0 + $0x10] sm:$0xff] }
   0x2   :  { %v15_v2 = vld [vmem:[%s257_s0] sm:$0xff]  ;;  %v168_v3 = vpack.c.bf16 %v20_v1, %v19_v0  ;;  %165 = vmatprep.mubr.msk.f32.mxu1 %vm28_vm0, %v17_v4 }
   0x3   :  { %162 = vmatprep.mubr.msk.f32.mxu0 %vm28_vm0, %v15_v2 }
   0x4   :  { %8 = vsyncpa [#allocation3], 0  ;;  %169 = vmatprep.subr.bf16.mxu0 %v168_v3  ;;  %172 = vmatprep.subr.bf16.mxu1 %v168_v3  ;;  %v16_v5 = vld [vmem:[%s257_s0 + $0x8] sm:$0xff]  ;;  %v18_v6 = vld [vmem:[%s257_s0 + $0x18] sm:$0xff]  ;;  %s201_s25 = smov [#allocation2]   ;;  %vm126_vm1 = vcmask 785408  }
   0x5   :  { %171 = vmatpush3.bf16.msra.mxu0 %v168_v3  ;;  %173 = vmatpush3.bf16.msra.mxu1 %v168_v3  ;;  %v147_v7 = vld [vmem:[%s259_s2] ss:$0 sm:$0xff]  ;;  %s136_s26 = sshll.u32 %s201_s25, 4  ;;  %s137_s26 = int_to_ptr.vmem [resolvable:$true] %s136_s26 }
   0x6   :  { %s177_s0 = scalar_lea.vmem %s137_s26, 512  ;;  %p182_p1 = scmp.lt.s32.totalorder %s137_s26, %s137_s26 }
   0x7   :  { %p178_p0 = scmp.ne.s32.totalorder %s137_s26, %s177_s0  ;;  %p183_p2 = scmp.lt.s32.totalorder %s177_s0, %s177_s0 }
   0x8   :  { %163 = vmatmul.mubr.msk.f32.vlgmr.msra.gmra.mrb[0].mxu0 %vm28_vm0, %v16_v5  ;;  %166 = vmatmul.mubr.msk.f32.vlgmr.msra.gmra.mrb[0].mxu1 %vm28_vm0, %v18_v6 }
   0x9   :  { %p184_p3 = por %p183_p2, %p182_p1 }
   0xb   :  { %p185_p4 = pnand %p184_p3, %p178_p0 }
  0xdb   :  { %v164_v8 = vpop.f32.mrb[0].mxu0  ;;  %v167_v9 = vpop.f32.mrb[0].mxu1 }
  0xdc   :  { %v113_v10 = vadd.f32 %v164_v8, %v147_v7  ;;  %v123_v11 = vadd.f32 %v167_v9, %v147_v7  ;;  %v107_v12 = vpop.f32.mrb[1].mxu0  ;;  %v117_v13 = vpop.f32.mrb[1].mxu1 }
  0xdd   :  { %v108_v14 = vadd.f32 %v147_v7, %v107_v12  ;;  %v118_v15 = vadd.f32 %v147_v7, %v117_v13 }
  0xde   :  { %128 = vst.msk [vmem:[#allocation2 + $0x8] sm:$0xff] %vm126_vm1, %v113_v10  ;;  %130 = vst.msk [vmem:[#allocation2 + $0x18] sm:$0xff] %vm126_vm1, %v123_v11 }
  0xdf   :  { %127 = vst.msk [vmem:[#allocation2] sm:$0xff] %vm126_vm1, %v108_v14  ;;  %129 = vst.msk [vmem:[#allocation2 + $0x10] sm:$0xff] %vm126_vm1, %v118_v15 }
  0xe0   :  { %188 = shalt.err (!%p185_p4)
}
  0xe1   :  { %s189_s28 = scalar_lea.hbm %s260_s3, 512 }
  0xe2   :  { %p190_p5 = scmp.ne.s32.totalorder %s260_s3, %s189_s28  ;;  %p193_p6 = scmp.lt.u32.totalorder %s189_s28, %s260_s3 }
  0xe4   :  { %p195_p7 = pnand %p193_p6, %p190_p5 }
  0xe6   :  { %198 = shalt.err (!%p195_p7)
}
  0xe7   :  { %s202_s6 = smov 128   ;;  %s203_s7 = smov 8  }
  0xe8   :  { %142 = dma.vmem_to_hbm [thread:$0]  %s137_s26, 512, %s260_s3, [#allocation3], %s202_s6, %s202_s6, %s203_s7  }
  0xe9   :  { %199 = dma.done.wait [#allocation3], 512  }
  0xea   :  { %200 = vsyncadd [#allocation3], 4294966784 }
  0xeb   :  { %146 = vsyncpa [#allocation3], 1 }

</bundles_post_ra>
